<compile_context>
chip_gen: v5e
topology: v5e:2x2
jax: 0.10.0
libtpu: 0.0.40
codegen_flags: <defaults>
</compile_context>

<pallas_src>
import functools

import jax
import jax.numpy as jnp
from jax.experimental import pallas as pl
from jax.experimental.pallas import tpu as pltpu


# ----------------------------------------------------------------------------
# One-time, eager hardware queries (all with safe fallbacks).
# ----------------------------------------------------------------------------

def _vmem_capacity_bytes():
    try:
        return int(pltpu.get_tpu_info().vmem_capacity_bytes)
    except Exception:
        return 128 * 1024 * 1024  # v5e/v6e physical VMEM


def _vmem_budget_and_limit():
    """Per-generation (budget for block sizing, vmem_limit_bytes)."""
    cap = _vmem_capacity_bytes()
    # v5e/v6e (128 MiB physical): ~56 MiB working budget, 64 MiB scoped limit.
    # v7x (64 MiB per TensorCore): ~35 MiB budget, ~46 MiB limit.
    budget = min(int(cap * 0.55), 56 * 1024 * 1024)
    limit = min(max(int(cap * 0.72), budget + 4 * 1024 * 1024), 64 * 1024 * 1024)
    return budget, limit


_ROLL_NUMPY = None


def _roll_is_numpy_convention():
    """True iff pltpu.roll(x, s, axis)[j] == x[j - s]  (jnp.roll semantics).

    Resolved once with a tiny eager probe; if the probe cannot run eagerly
    (e.g. first call happens under a jit trace, or no device) we fall back to
    the jnp.roll convention instead of raising.
    """
    global _ROLL_NUMPY
    if _ROLL_NUMPY is None:
        try:
            def probe(x_ref, o_ref):
                o_ref[...] = pltpu.roll(x_ref[...], 1, 1)

            x = jnp.arange(8 * 128, dtype=jnp.float32).reshape(8, 128)
            y = pl.pallas_call(
                probe, out_shape=jax.ShapeDtypeStruct((8, 128), jnp.float32)
            )(x)
            _ROLL_NUMPY = bool(jax.device_get(y[0, 1]) == 0.0)  # x[0,0] == 0
        except Exception:
            _ROLL_NUMPY = True
    return _ROLL_NUMPY


# ----------------------------------------------------------------------------
# Kernel
# ----------------------------------------------------------------------------

def _rope_kernel(x_ref, pos_ref, aux_ref, o_ref, *, shift_prev, shift_next):
    x = x_ref[...].astype(jnp.float32)            # (bm, H)
    pos = pos_ref[...].astype(jnp.float32)        # (bm, 1) int32 -> f32 on-chip
    inv_signed = aux_ref[0:1, :]                  # (1, H): [-f0, +f0, -f1, +f1, ...]
    is_even = aux_ref[1:2, :] > 0.5               # (1, H): True on even lanes

    # Angles from the resident signed inverse-frequency row (no HBM tables).
    # cos is even  -> sign drops out (plain cos row);
    # sin is odd   -> [-sin, +sin, ...] i.e. the rotation sign comes for free.
    ang = pos * inv_signed                        # (bm, H)
    c = jnp.cos(ang)
    s = jnp.sin(ang)
    # TODO(synk): for hidden >= 256 (half-width stays lane-dense) EUP work can
    # be halved by computing cos/sin on a (bm, hidden//2) block and
    # lane-expanding; for hidden <= 128 the half-width array still occupies
    # full (8,128) vregs, so there is no transcendental saving to be had.

    # Interleaved pair swap x[2i] <-> x[2i+1] via two XLU lane rotations; the
    # wrapped lanes (0 and H-1) are never selected by the parity mask.
    x_prev = pltpu.roll(x, shift_prev, 1)         # x_prev[j] = x[j-1]
    x_next = pltpu.roll(x, shift_next, 1)         # x_next[j] = x[j+1]
    swapped = jnp.where(is_even, x_next, x_prev)

    # out[2i]   = x[2i]  *cos + x[2i+1]*(-sin)
    # out[2i+1] = x[2i+1]*cos + x[2i]  *(+sin)
    o_ref[...] = (x * c + swapped * s).astype(o_ref.dtype)


# ----------------------------------------------------------------------------
# Wrapper
# ----------------------------------------------------------------------------

def _choose_block_rows(rows, hidden, itemsize, requested, vmem_budget):
    # Sublane packing granularity of the activation dtype (f32->8, bf16->16).
    pack = max(8, 32 // max(1, itemsize))
    # Per-row working set of one grid step: double-buffered input + output
    # blocks plus ~6 block-sized f32 temporaries (x_f32, angles, cos, sin,
    # rolled copies / swapped).
    per_row = hidden * (4 * itemsize + 6 * 4)
    max_rows = max(pack, vmem_budget // per_row)
    cap = min(int(requested), max_rows)
    if rows <= cap:
        return rows                            # single full-extent block (legal)
    return max(pack, (cap // pack) * pack)     # ragged last block handled by Pallas


def rope_forward(x, token_positions, aux, *, block_rows=8192):
    """Apply interleaved rotary embedding over the last axis of x.

    `token_positions` broadcasts against x.shape[:-1] (same semantics as the
    PyTorch module's cos/sin table gather).  `aux` is the (2, hidden) resident
    array built by RotaryPositionalEmbedding (signed inv-freqs + parity mask).
    """
    orig_shape = x.shape
    hidden = orig_shape[-1]
    assert hidden % 2 == 0, "hidden_size must be even for RoPE"
    # NOTE: hidden % 128 == 0 keeps the output lane-dense (unmasked vst).
    # hidden = 64 (per-head RoPE) still works but stores are masked; prefer
    # applying RoPE over a fused (n_heads * head_dim) axis when possible.
    lead = orig_shape[:-1]
    rows = 1
    for d in lead:
        rows *= d

    x2d = x.reshape(rows, hidden)

    # Keep positions int32 end-to-end; only broadcast when shapes truly differ.
    # (f32 positions are exact up to 2**24, far beyond typical max_seq_len.)
    pos = jnp.asarray(token_positions, dtype=jnp.int32)
    if pos.shape != lead:
        pos = jnp.broadcast_to(pos, lead)
    pos2d = pos.reshape(rows, 1)

    vmem_budget, vmem_limit = _vmem_budget_and_limit()
    itemsize = jnp.dtype(x.dtype).itemsize
    bm = _choose_block_rows(rows, hidden, itemsize, block_rows, vmem_budget)
    grid = (pl.cdiv(rows, bm),)

    if _roll_is_numpy_convention():
        shift_prev, shift_next = 1, hidden - 1
    else:
        shift_prev, shift_next = hidden - 1, 1

    kernel = functools.partial(
        _rope_kernel, shift_prev=shift_prev, shift_next=shift_next
    )

    out = pl.pallas_call(
        kernel,
        out_shape=jax.ShapeDtypeStruct((rows, hidden), x.dtype),  # .to(x.dtype)
        grid_spec=pltpu.PrefetchScalarGridSpec(
            num_scalar_prefetch=0,
            grid=grid,
            in_specs=[
                pl.BlockSpec((bm, hidden), lambda i: (i, 0)),   # x rows
                pl.BlockSpec((bm, 1), lambda i: (i, 0)),        # int32 positions
                pl.BlockSpec((2, hidden), lambda i: (0, 0)),    # resident aux rows
            ],
            out_specs=pl.BlockSpec((bm, hidden), lambda i: (i, 0)),
        ),
        compiler_params=pltpu.CompilerParams(
            # TODO(synk): on v7x split the row grid across both TensorCores via
            # CORE_PARALLEL / pl.core_map; plain "parallel" barely changes codegen.
            dimension_semantics=("parallel",),
            vmem_limit_bytes=vmem_limit,
        ),
    )(x2d, pos2d, aux)

    return out.reshape(orig_shape)


class RotaryPositionalEmbedding:
    """JAX/Pallas port of the PyTorch RotaryPositionalEmbedding module.

    Instead of caching (max_seq_len, hidden) cos/sin tables in HBM and
    gathering rows per call, the kernel recomputes cos/sin from a resident
    (2, hidden) auxiliary array: row 0 = repeat-interleaved inverse
    frequencies with alternating sign (sin's oddness bakes the rotation sign
    in for free), row 1 = even-lane parity mask for the interleaved pair swap.
    Identical f32 math, no table storage or gather traffic.
    """

    def __init__(self, theta, hidden_size, max_seq_len, device=None,
                 block_rows=8192):
        assert hidden_size % 2 == 0
        del device  # interface parity with the torch module
        self.theta = float(theta)
        self.hidden_size = int(hidden_size)
        self.max_seq_len = int(max_seq_len)   # kept for interface parity
        self.block_rows = int(block_rows)

        idx = jnp.arange(0, hidden_size, 2, dtype=jnp.float32)
        inv_freq = 1.0 / (self.theta ** (idx / hidden_size))              # (H/2,)
        inv_rep = jnp.repeat(inv_freq, 2)                                 # (H,)
        alt_sign = jnp.tile(jnp.array([-1.0, 1.0], jnp.float32), hidden_size // 2)
        parity = jnp.tile(jnp.array([1.0, 0.0], jnp.float32), hidden_size // 2)
        self.aux = jnp.stack([inv_rep * alt_sign, parity])                # (2, H)

        # Resolve pltpu.roll's direction once, eagerly (never under a trace).
        _roll_is_numpy_convention()

    def __call__(self, x, token_positions):
        return rope_forward(
            x, token_positions, self.aux, block_rows=self.block_rows
        )


if __name__ == "__main__":
    key = jax.random.PRNGKey(0)
    batch, seq, hidden = 2, 8, 128   # hidden = typical RoPE head_dim (lane-dense)
    theta = 10000.0
    max_seq_len = 16

    kx, kp = jax.random.split(key)
    x = jax.random.normal(kx, (batch, seq, hidden), dtype=jnp.float32)
    token_positions = jax.random.randint(
        kp, (batch, seq), 0, max_seq_len, dtype=jnp.int32
    )

    rope = RotaryPositionalEmbedding(theta, hidden, max_seq_len)
    y = rope(x, token_positions)
    jax.block_until_ready(y)

    # Pure-JAX reference mirroring the PyTorch module (cached cos/sin tables).
    idx = jnp.arange(0, hidden, 2, dtype=jnp.float32)
    inv_freq = 1.0 / (theta ** (idx / hidden))
    t = jnp.arange(max_seq_len, dtype=jnp.float32)
    emb = jnp.repeat(jnp.outer(t, inv_freq), 2, axis=-1)        # (max_seq_len, hidden)
    cos = jnp.cos(emb)[token_positions]                         # (batch, seq, hidden)
    sin = jnp.sin(emb)[token_positions]
    x_even = x[..., ::2]
    x_odd = x[..., 1::2]
    x_rot = jnp.stack((-x_odd, x_even), axis=-1).reshape(x.shape)
    ref = (x * cos + x_rot * sin).astype(x.dtype)

    assert y.shape == ref.shape and y.dtype == ref.dtype
    max_err = float(jnp.max(jnp.abs(y - ref)))
    assert jnp.allclose(y, ref, atol=1e-4, rtol=1e-4), f"max abs err {max_err}"

    print("KERNEL_OK")
</pallas_src>

<mosaic_0001>
module attributes {stable_mosaic.version = 11 : i64} {
  func.func @probe(%arg0: memref<8x128xf32, #tpu.memory_space<vmem>>, %arg1: memref<8x128xf32, #tpu.memory_space<vmem>>) attributes {dimension_semantics = [], scalar_prefetch = 0 : i64, scratch_operands = 0 : i64, tpu.core_type = #tpu.core_type<tc>} {
    %c0 = arith.constant 0 : index
    %c0_0 = arith.constant 0 : index
    %0 = vector.load %arg0[%c0, %c0_0] : memref<8x128xf32, #tpu.memory_space<vmem>>, vector<8x128xf32>
    %c1_i32 = arith.constant 1 : i32
    %1 = tpu.dynamic_rotate %0 by %c1_i32 dim 1 : vector<8x128xf32>, i32 -> vector<8x128xf32>
    %c0_1 = arith.constant 0 : index
    %c0_2 = arith.constant 0 : index
    %2 = vector.load %arg1[%c0_1, %c0_2] : memref<8x128xf32, #tpu.memory_space<vmem>>, vector<8x128xf32>
    tpu.vector_store %arg1[%c0_1, %c0_2], %1 {strides = array<i32>} : memref<8x128xf32, #tpu.memory_space<vmem>>, vector<8x128xf32>,
    return
  }
}

module attributes {stable_mosaic.version = 11 : i64} {
  func.func @_rope_kernel(%arg0: i32, %arg1: memref<16x128xf32, #tpu.memory_space<vmem>>, %arg2: memref<16x1xi32, #tpu.memory_space<vmem>>, %arg3: memref<2x128xf32, #tpu.memory_space<vmem>>, %arg4: memref<16x128xf32, #tpu.memory_space<vmem>>) attributes {dimension_semantics = [#tpu.dimension_semantics<parallel>], iteration_bounds = array<i64: 1>, scalar_prefetch = 0 : i64, scratch_operands = 0 : i64, tpu.core_type = #tpu.core_type<tc>, window_params = [{transform_indices = @transform_0, window_bounds = array<i64: 16, 128>}, {transform_indices = @transform_1, window_bounds = array<i64: 16, 1>}, {pipeline_mode = #tpu.pipeline_mode<synchronous>, transform_indices = @transform_2, window_bounds = array<i64: 2, 128>}, {transform_indices = @transform_3, window_bounds = array<i64: 16, 128>}]} {
    %c0 = arith.constant 0 : index
    %c0_0 = arith.constant 0 : index
    %0 = vector.load %arg1[%c0, %c0_0] : memref<16x128xf32, #tpu.memory_space<vmem>>, vector<16x128xf32>
    %c0_1 = arith.constant 0 : index
    %c0_2 = arith.constant 0 : index
    %1 = vector.load %arg2[%c0_1, %c0_2] : memref<16x1xi32, #tpu.memory_space<vmem>>, vector<16x1xi32>
    %2 = arith.sitofp %1 : vector<16x1xi32> to vector<16x1xf32>
    %c0_3 = arith.constant 0 : index
    %c0_4 = arith.constant 0 : index
    %3 = vector.load %arg3[%c0_3, %c0_4] : memref<2x128xf32, #tpu.memory_space<vmem>>, vector<1x128xf32>
    %c1 = arith.constant 1 : index
    %c0_5 = arith.constant 0 : index
    %4 = vector.load %arg3[%c1, %c0_5] : memref<2x128xf32, #tpu.memory_space<vmem>>, vector<1x128xf32>
    %cst = arith.constant 5.000000e-01 : f32
    %5 = vector.broadcast %cst : f32 to vector<1x128xf32>
    %6 = arith.cmpf ogt, %4, %5 : vector<1x128xf32>
    %7 = vector.broadcast %2 : vector<16x1xf32> to vector<16x128xf32>
    %8 = vector.broadcast %3 : vector<1x128xf32> to vector<16x128xf32>
    %9 = arith.mulf %7, %8 : vector<16x128xf32>
    %10 = math.cos %9 : vector<16x128xf32>
    %11 = math.sin %9 : vector<16x128xf32>
    %c1_i32 = arith.constant 1 : i32
    %12 = tpu.dynamic_rotate %0 by %c1_i32 dim 1 : vector<16x128xf32>, i32 -> vector<16x128xf32>
    %c127_i32 = arith.constant 127 : i32
    %13 = tpu.dynamic_rotate %0 by %c127_i32 dim 1 : vector<16x128xf32>, i32 -> vector<16x128xf32>
    %14 = vector.shape_cast %6 : vector<1x128xi1> to vector<1x128xi1>
    %15 = vector.broadcast %14 : vector<1x128xi1> to vector<16x128xi1>
    %16 = arith.select %15, %13, %12 : vector<16x128xi1>, vector<16x128xf32>
    %17 = arith.mulf %0, %10 : vector<16x128xf32>
    %18 = arith.mulf %16, %11 : vector<16x128xf32>
    %19 = arith.addf %17, %18 : vector<16x128xf32>
    %c0_6 = arith.constant 0 : index
    %c0_7 = arith.constant 0 : index
    %20 = vector.load %arg4[%c0_6, %c0_7] : memref<16x128xf32, #tpu.memory_space<vmem>>, vector<16x128xf32>
    tpu.vector_store %arg4[%c0_6, %c0_7], %19 {strides = array<i32>} : memref<16x128xf32, #tpu.memory_space<vmem>>, vector<16x128xf32>,
    return
  }
  func.func @transform_0(%arg0: i32) -> (i32, i32) {
    %c0_i32 = arith.constant 0 : i32
    %c0_i32_0 = arith.constant 0 : i32
    return %arg0, %c0_i32 : i32, i32
  }
  func.func @transform_1(%arg0: i32) -> (i32, i32) {
    %c0_i32 = arith.constant 0 : i32
    %c0_i32_0 = arith.constant 0 : i32
    return %arg0, %c0_i32 : i32, i32
  }
  func.func @transform_2(%arg0: i32) -> (i32, i32) {
    %c0_i32 = arith.constant 0 : i32
    %c0_i32_0 = arith.constant 0 : i32
    %c0_i32_1 = arith.constant 0 : i32
    return %c0_i32, %c0_i32_0 : i32, i32
  }
  func.func @transform_3(%arg0: i32) -> (i32, i32) {
    %c0_i32 = arith.constant 0 : i32
    %c0_i32_0 = arith.constant 0 : i32
    return %arg0, %c0_i32 : i32, i32
  }
}

</mosaic_0001>

<bundles_post_ra>
// kernel: tpu_custom_call.1
= control target key start
LH: loop header
LB: loop body
LE: loop exit
PB: predicated region body
PF: predicated region fallthrough
CT: control target
= control target key end

     0   :  { %6 = vsyncpa [#allocation3], 0  ;;  %s118_s0 = inlined_call_operand.hbm [shape: f32[8,128], index: 0, kind: input, shape index: {}]   ;;  %s119_s1 = inlined_call_operand.hbm [shape: f32[8,128], index: 1, kind: output, shape index: {}]  }
   0x1   :  { %7 = vsyncpa [#allocation4], 0  ;;  %s13_s8 = sshll.u32 %s118_s0, 4  ;;  %s99_s9 = smov [#allocation2]   ;;  %s14_s8 = int_to_ptr.hbm [resolvable:$true] %s13_s8 }
   0x2   :  { %s15_s10 = sshll.u32 %s99_s9, 4  ;;  %s16_s10 = int_to_ptr.vmem [resolvable:$true] %s15_s10 }
   0x3   :  { %18 = dma.hbm_to_vmem [thread:$0]  %s14_s8, 128, %s16_s10, [#allocation3]  }
   0x4   :  { %95 = dma.done.wait [#allocation3], 128  }
   0x5   :  { %96 = vsyncadd [#allocation3], 4294967168  ;;  %v23_v0 = vld [vmem:[#allocation2] sm:$0xff]  ;;  %s100_s11 = smov 1   ;;  %s101_s12 = smov [#allocation5]  }
   0x6   :  { %24 = vrot.lane.b32.xlu0 %v23_v0, %s100_s11  ;;  %s32_s13 = sshll.u32 %s101_s12, 4  ;;  %s34_s16 = sshll.u32 %s119_s1, 4  ;;  %s33_s13 = int_to_ptr.vmem [resolvable:$true] %s32_s13  ;;  %s35_s16 = int_to_ptr.hbm [resolvable:$true] %s34_s16 }
  0x78   :  { %v25_v1 = vpop.permute.xlu0 %24 }
  0x79   :  { %26 = vst [vmem:[#allocation5] sm:$0xff] %v25_v1 }
  0x7a   :  { %37 = dma.vmem_to_hbm [thread:$0]  %s33_s13, 128, %s35_s16, [#allocation4]  }
  0x7b   :  { %97 = dma.done.wait [#allocation4], 128  }
  0x7c   :  { %98 = vsyncadd [#allocation4], 4294967168 }
  0x7d   :  { %42 = vsyncpa [#allocation3], 1 }
  0x7e   :  { %43 = vsyncpa [#allocation4], 1 }

// kernel: tpu_custom_call.1
= control target key start
LH: loop header
LB: loop body
LE: loop exit
PB: predicated region body
PF: predicated region fallthrough
CT: control target
= control target key end

     0   :  { %v746_v2 = vmov 0   ;;  %s747_s16 = smov 1   ;;  %s748_s17 = smov 127   ;;  %s999_s0 = inlined_call_operand.vmem [shape: f32[16,128], index: 0, kind: input, shape index: {}]   ;;  %s1000_s1 = inlined_call_operand.vmem [shape: s32[16,1], index: 1, kind: input, shape index: {}]   ;;  %s1001_s2 = inlined_call_operand.vmem [shape: f32[2,128], index: 2, kind: input, shape index: {}]   ;;  %s1002_s3 = inlined_call_operand.hbm [shape: f32[16,128], index: 3, kind: output, shape index: {}]  }
   0x1   :  { %v17_v0 = vld [vmem:[%s1000_s1] sm:$0xff]  ;;  %718 = vset.pattern.permute.xlu0 %v746_v2  ;;  %v18_v4 = vld [vmem:[%s1000_s1 + $0x8] sm:$0xff] }
   0x2   :  { %v784_v1 = vld [vmem:[%s999_s0] sm:$0xff]  ;;  %v19_v3 = vcvt.s32.f32 %v17_v0 }
   0x3   :  { %655 = vrot.lane.b32.xlu1 %v784_v1, %s747_s16  ;;  %659 = vrot.lane.b32.xlu2 %v784_v1, %s748_s17 }
   0x4   :  { %26 = vperm.xlu0 %718, %v19_v3  }
   0x5   :  { %8 = vsyncpa [#allocation3], 0  ;;  %v795_v5 = vld [vmem:[%s999_s0 + $0x8] sm:$0xff]  ;;  %v20_v6 = vcvt.s32.f32 %v18_v4  ;;  %v719_v7 = vld [vmem:[%s1001_s2] ss:$0 sm:$0xff]  ;;  %s682_s27 = sshll.u32 %s1002_s3, 4  ;;  %s683_s27 = int_to_ptr.hbm [resolvable:$true] %s682_s27 }
   0x6   :  { %v749_v26 = vmov 683565275   ;;  %v750_v28 = vmov 2475754826   ;;  %v751_v32 = vmov 2131351028  }
   0x7   :  { %v752_v35 = vmov 2102212464   ;;  %v753_v38 = vmov 920167782   ;;  %v754_v41 = vmov 1326507024  }
   0x8   :  { %s756_s28 = smov 128   ;;  %s757_s29 = smov 8  }
   0xb   :  { %657 = vrot.lane.b32.xlu1 %v795_v5, %s747_s16  ;;  %661 = vrot.lane.b32.xlu2 %v795_v5, %s748_s17 }
   0xc   :  { %31 = vperm.xlu0 %718, %v20_v6  }
  0x76   :  { %v27_v8 = vpop.permute.xlu0 %26 }
  0x77   :  { %v802_v9 = vmul.f32 %v719_v7, %v27_v8 }
  0x79   :  { %v40_v10 = vand.u32 2139095040, %v802_v9  ;;  %v37_v12 = vand.u32 2147483647, %v802_v9 }
  0x7b   :  { %v41_v11 = vshrl.u32 %v40_v10, 23  ;;  %v44_v17 = vand.u32 8388607, %v37_v12 }
  0x7d   :  { %v694_v13 = vadd.s32 4294967169, %v41_v11  ;;  %v45_v22 = vor.u32 8388608, %v44_v17 }
  0x7e   :  { %v32_v14 = vpop.permute.xlu0 %31 }
  0x7f   :  { %v47_v15 = vadd.s32 1, %v694_v13  ;;  %v806_v16 = vmul.f32 %v719_v7, %v32_v14  ;;  %v824_v50 = vshll.u32 %v45_v22, 8 }
  0x81   :  { %vm48_vm0 = vcmp.gt.s32.totalorder %v47_v15, 0  ;;  %v191_v19 = vand.u32 2147483647, %v806_v16  ;;  %v194_v20 = vand.u32 2139095040, %v806_v16  ;;  %v836_v60 = vand.u32 65535, %v824_v50 }
  0x82   :  { %v49_v18 = vsel %vm48_vm0, %v47_v15, 0  ;;  %v87_v10 = vshrl.u32 %v824_v50, 16 }
  0x83   :  { %v51_v21 = vand.u32 31, %v49_v18  ;;  %v195_v24 = vshrl.u32 %v194_v20, 23  ;;  %v812_v25 = vshrl.u32 %v49_v18, 5  ;;  %v198_v30 = vand.u32 8388607, %v191_v19 }
  0x85   :  { %v52_v23 = vsub.s32 32, %v51_v21  ;;  %v54_v27 = vshll.u32 %v749_v26, %v51_v21  ;;  %v57_v29 = vshll.u32 %v750_v28, %v51_v21  ;;  %v60_v34 = vshll.u32 %v751_v32, %v51_v21 }
  0x86   :  { %v63_v37 = vshll.u32 %v752_v35, %v51_v21  ;;  %v66_v40 = vshll.u32 %v753_v38, %v51_v21  ;;  %v697_v46 = vadd.s32 4294967169, %v195_v24  ;;  %vm69_vm1 = vcmp.lt.s32.totalorder %v812_v25, 1 }
  0x87   :  { %v55_v31 = vshrl.u32 %v750_v28, %v52_v23  ;;  %v58_v33 = vshrl.u32 %v751_v32, %v52_v23  ;;  %v61_v36 = vshrl.u32 %v752_v35, %v52_v23  ;;  %v64_v39 = vshrl.u32 %v753_v38, %v52_v23 }
  0x88   :  { %v67_v42 = vshrl.u32 %v754_v41, %v52_v23  ;;  %vm71_vm2 = vcmp.lt.s32.totalorder %v812_v25, 3  ;;  %vm72_vm3 = vcmp.lt.s32.totalorder %v812_v25, 4  ;;  %v199_v53 = vor.u32 8388608, %v198_v30 }
  0x89   :  { %v56_v43 = vor.u32 %v55_v31, %v54_v27  ;;  %v59_v44 = vor.u32 %v58_v33, %v57_v29  ;;  %v62_v45 = vor.u32 %v61_v36, %v60_v34  ;;  %v65_v47 = vor.u32 %v64_v39, %v63_v37 }
  0x8a   :  { %v68_v48 = vor.u32 %v67_v42, %v66_v40  ;;  %v201_v54 = vadd.s32 1, %v697_v46  ;;  %vm70_vm4 = vcmp.lt.s32.totalorder %v812_v25, 2  ;;  %v53_v63 = vshrl.u32 %v749_v26, %v52_v23 }
  0x8b   :  { %v81_v49 = vsel %vm69_vm1, %v59_v44, %v62_v45  ;;  %v78_v51 = vsel %vm72_vm3, %v65_v47, 920167782  ;;  %v77_v55 = vsel %vm69_vm1, %v56_v43, %v59_v44  ;;  %v74_v59 = vsel %vm72_vm3, %v62_v45, 2102212464 }
  0x8c   :  { %v82_v52 = vsel %vm72_vm3, %v68_v48, 1326507024  ;;  %v79_v56 = vsel %vm71_vm2, %v62_v45, %v78_v51  ;;  %vm202_vm5 = vcmp.gt.s32.totalorder %v201_v54, 0  ;;  %v843_v4 = vshll.u32 %v199_v53, 8 }
  0x8d   :  { %v83_v57 = vsel %vm71_vm2, %v65_v47, %v82_v52  ;;  %v841_v0 = vsel %vm70_vm4, %v77_v55, %v79_v56  ;;  %v203_v3 = vsel %vm202_vm5, %v201_v54, 0  ;;  %v73_v7 = vsel %vm69_vm1, %v53_v63, %v56_v43 }
  0x8e   :  { %v84_v58 = vsel %vm70_vm4, %v81_v49, %v83_v57  ;;  %v75_v8 = vsel %vm71_vm2, %v59_v44, %v74_v59  ;;  %v110_v14 = vand.u32 65535, %v841_v0  ;;  %v205_v15 = vand.u32 31, %v203_v3 }
  0x8f   :  { %v88_v61 = vand.u32 65535, %v84_v58  ;;  %v89_v62 = vshrl.u32 %v84_v58, 16  ;;  %v111_v18 = vshrl.u32 %v841_v0, 16  ;;  %v860_v20 = vand.u32 65535, %v843_v4 }
  0x90   :  { %v863_v21 = vshrl.u32 %v843_v4, 16  ;;  %v865_v23 = vshrl.u32 %v203_v3, 5  ;;  %v867_v24 = vsub.s32 32, %v205_v15  ;;  %v208_v30 = vshll.u32 %v749_v26, %v205_v15 }
  0x91   :  { %v846_v6 = vmul.u32 %v89_v62, %v836_v60  ;;  %v90_v11 = vmul.u32 %v88_v61, %v836_v60  ;;  %v856_v17 = vmul.u32 %v88_v61, %v87_v10  ;;  %v93_v22 = vmul.u32 %v89_v62, %v87_v10 }
  0x92   :  { %v211_v31 = vshll.u32 %v750_v28, %v205_v15  ;;  %v209_v33 = vshrl.u32 %v750_v28, %v867_v24  ;;  %v212_v34 = vshrl.u32 %v751_v32, %v867_v24  ;;  %v214_v36 = vshll.u32 %v751_v32, %v205_v15 }
  0x93   :  { %v94_v13 = vshll.u32 %v846_v6, 16  ;;  %v217_v37 = vshll.u32 %v752_v35, %v205_v15  ;;  %v215_v39 = vshrl.u32 %v752_v35, %v867_v24  ;;  %v218_v40 = vshrl.u32 %v753_v38, %v867_v24 }
  0x94   :  { %v220_v42 = vshll.u32 %v753_v38, %v205_v15  ;;  %v221_v43 = vshrl.u32 %v754_v41, %v867_v24  ;;  %v96_v44 = vshll.u32 %v856_v17, 16  ;;  %v879_v46 = vor.u32 %v209_v33, %v208_v30 }
  0x95   :  { %vm98_vm6 = vc.u32 %v90_v11, %v94_v13  ;;  %v100_v29 = vadd.s32 %v94_v13, %v90_v11  ;;  %v881_v47 = vor.u32 %v212_v34, %v211_v31  ;;  %v883_v48 = vor.u32 %v215_v39, %v214_v36 }
  0x96   :  { %v99_v27 = vsel %vm98_vm6, 1, %v746_v2  ;;  %v219_v28 = vor.u32 %v218_v40, %v217_v37  ;;  %v222_v49 = vor.u32 %v221_v43, %v220_v42  ;;  %vm223_vm7 = vcmp.lt.s32.totalorder %v865_v23, 1 }
  0x97   :  { %v101_v45 = vadd.s32 %v99_v27, %v93_v22  ;;  %v113_v32 = vmul.u32 %v111_v18, %v836_v60  ;;  %vm226_vm8 = vcmp.lt.s32.totalorder %v865_v23, 4  ;;  %v231_v35 = vsel %vm223_vm7, %v879_v46, %v881_v47 }
  0x98   :  { %vm102_vm9 = vc.u32 %v100_v29, %v96_v44  ;;  %vm225_vm10 = vcmp.lt.s32.totalorder %v865_v23, 3  ;;  %v232_v38 = vsel %vm226_vm8, %v219_v28, 920167782  ;;  %v235_v41 = vsel %vm223_vm7, %v881_v47, %v883_v48 }
  0x99   :  { %v236_v51 = vsel %vm226_vm8, %v222_v49, 1326507024  ;;  %vm224_vm11 = vcmp.lt.s32.totalorder %v865_v23, 2  ;;  %v233_v52 = vsel %vm225_vm10, %v883_v48, %v232_v38  ;;  %v103_v54 = vsel %vm102_vm9, 1, %v746_v2 }
  0x9a   :  { %v237_v53 = vsel %vm225_vm10, %v219_v28, %v236_v51  ;;  %v114_v55 = vmul.u32 %v110_v14, %v87_v10  ;;  %v234_v56 = vsel %vm224_vm11, %v231_v35, %v233_v52  ;;  %v105_v58 = vadd.s32 %v103_v54, %v101_v45 }
  0x9b   :  { %v238_v57 = vsel %vm224_vm11, %v235_v41, %v237_v53  ;;  %v265_v62 = vshrl.u32 %v234_v56, 16  ;;  %v116_v63 = vshll.u32 %v113_v32, 16  ;;  %v914_v0 = vsel %vm70_vm4, %v73_v7, %v75_v8 }
  0x9c   :  { %v242_v59 = vand.u32 65535, %v238_v57  ;;  %v243_v61 = vshrl.u32 %v238_v57, 16  ;;  %v264_v3 = vand.u32 65535, %v234_v56  ;;  %v95_v11 = vshrl.u32 %v846_v6, 16 }
  0x9d   :  { %v112_v13 = vmul.u32 %v110_v14, %v836_v60  ;;  %v115_v15 = vmul.u32 %v111_v18, %v87_v10  ;;  %v267_v29 = vmul.u32 %v265_v62, %v860_v20  ;;  %v97_v30 = vshrl.u32 %v856_v17, 16 }
  0x9e   :  { %v245_v22 = vmul.u32 %v243_v61, %v860_v20  ;;  %v246_v27 = vmul.u32 %v242_v59, %v863_v21  ;;  %v106_v31 = vadd.s32 %v105_v58, %v95_v11  ;;  %v118_v33 = vshll.u32 %v114_v55, 16 }
  0x9f   :  { %v244_v25 = vmul.u32 %v242_v59, %v860_v20  ;;  %v247_v7 = vmul.u32 %v243_v61, %v863_v21  ;;  %vm120_vm12 = vc.u32 %v112_v13, %v116_v63  ;;  %v268_v60 = vmul.u32 %v264_v3, %v863_v21 }
  0xa0   :  { %v248_v8 = vshll.u32 %v245_v22, 16  ;;  %v250_v6 = vshll.u32 %v246_v27, 16  ;;  %v121_v10 = vsel %vm120_vm12, 1, %v746_v2  ;;  %v122_v14 = vadd.s32 %v116_v63, %v112_v13 }
  0xa1   :  { %v123_v34 = vadd.s32 %v121_v10, %v115_v15  ;;  %v270_v36 = vshll.u32 %v267_v29, 16  ;;  %v266_v37 = vmul.u32 %v264_v3, %v860_v20  ;;  %v117_v39 = vshrl.u32 %v113_v32, 16 }
  0xa2   :  { %vm252_vm13 = vc.u32 %v244_v25, %v248_v8  ;;  %v254_v18 = vadd.s32 %v248_v8, %v244_v25  ;;  %vm124_vm14 = vc.u32 %v122_v14, %v118_v33  ;;  %v269_v42 = vmul.u32 %v265_v62, %v863_v21 }
  0xa3   :  { %v253_v17 = vsel %vm252_vm13, 1, %v746_v2  ;;  %v125_v43 = vsel %vm124_vm14, 1, %v746_v2  ;;  %v107_v44 = vadd.s32 %v106_v31, %v97_v30  ;;  %v249_v28 = vshrl.u32 %v245_v22, 16 }
  0xa4   :  { %v255_v40 = vadd.s32 %v253_v17, %v247_v7  ;;  %vm256_vm15 = vc.u32 %v254_v18, %v250_v6  ;;  %v127_v45 = vadd.s32 %v125_v43, %v123_v34  ;;  %v272_v38 = vshll.u32 %v268_v60, 16 }
  0xa5   :  { %v257_v49 = vsel %vm256_vm15, 1, %v746_v2  ;;  %vm274_vm0 = vc.u32 %v266_v37, %v270_v36  ;;  %v276_v41 = vadd.s32 %v270_v36, %v266_v37  ;;  %v228_v20 = vsel %vm226_vm8, %v883_v48, 2102212464 }
  0xa6   :  { %v259_v35 = vadd.s32 %v257_v49, %v255_v40  ;;  %v119_v32 = vshrl.u32 %v114_v55, 16  ;;  %v128_v51 = vadd.s32 %v127_v45, %v117_v39  ;;  %v275_v21 = vsel %vm274_vm0, 1, %v746_v2 }
  0xa7   :  { %v126_v52 = vadd.s32 %v122_v14, %v118_v33  ;;  %v277_v54 = vadd.s32 %v275_v21, %v269_v42  ;;  %vm278_vm1 = vc.u32 %v276_v41, %v272_v38  ;;  %v207_v56 = vshrl.u32 %v749_v26, %v867_v24 }
  0xa8   :  { %v260_v53 = vadd.s32 %v259_v35, %v249_v28  ;;  %v129_v57 = vadd.s32 %v128_v51, %v119_v32  ;;  %v251_v58 = vshrl.u32 %v246_v27, 16  ;;  %v279_v59 = vsel %vm278_vm1, 1, %v746_v2 }
  0xa9   :  { %vm132_vm2 = vc.u32 %v107_v44, %v126_v52  ;;  %v271_v61 = vshrl.u32 %v267_v29, 16  ;;  %v281_v62 = vadd.s32 %v279_v59, %v277_v54  ;;  %v227_v48 = vsel %vm223_vm7, %v207_v56, %v879_v46 }
  0xaa   :  { %v229_v55 = vsel %vm225_vm10, %v881_v47, %v228_v20  ;;  %v133_v63 = vadd.s32 1, %v129_v57  ;;  %v261_v3 = vadd.s32 %v260_v53, %v251_v58  ;;  %v130_v26 = vmul.u32 %v824_v50, %v914_v0 }
  0xab   :  { %v273_v24 = vshrl.u32 %v268_v60, 16  ;;  %v282_v11 = vadd.s32 %v281_v62, %v271_v61  ;;  %v280_v15 = vadd.s32 %v276_v41, %v272_v38  ;;  %v230_v22 = vsel %vm224_vm11, %v227_v48, %v229_v55 }
  0xac   :  { %v134_v13 = vsel %vm132_vm2, %v133_v63, %v129_v57  ;;  %v284_v31 = vmul.u32 %v843_v4, %v230_v22  ;;  %v131_v17 = vadd.s32 %v126_v52, %v107_v44  ;;  %vm39_vm8 = vcmp.lt.s32.totalorder %v802_v9, 0 }
  0xad   :  { %v135_v27 = vadd.s32 %v134_v13, %v130_v26  ;;  %v283_v29 = vadd.s32 %v282_v11, %v273_v24  ;;  %vm286_vm3 = vc.u32 %v261_v3, %v280_v15  ;;  %v285_v20 = vadd.s32 %v280_v15, %v261_v3  ;;  %v22_v24 = vld [vmem:[%s1001_s2 + $0x1] sm:$0x1]  ;;  %s755_s2 = smov [#allocation2]  }
  0xae   :  { %vm38_vm9 = vcmp.le.f32.partialorder %v37_v12, 0.7853982  ;;  %vm193_vm10 = vcmp.lt.s32.totalorder %v806_v16, 0  ;;  %vm23_vm11 = vcmp.gt.f32.partialorder %v22_v24, 0.5  ;;  %vm962_vm12 = vcmp.le.f32.partialorder %v191_v19, 0.7853982 }
  0xaf   :  { %v136_v46 = vadd.s32 536870912, %v135_v27  ;;  %v287_v30 = vadd.s32 1, %v283_v29  ;;  %vm180_vm13 = vweird.f32 %v802_v9  ;;  %s680_s24 = sshll.u32 %s755_s2, 4  ;;  %s681_s24 = int_to_ptr.vmem [resolvable:$true] %s680_s24 }
  0xb1   :  { %v137_v47 = vshrl.u32 %v136_v46, 30  ;;  %v288_v33 = vsel %vm286_vm3, %v287_v30, %v283_v29 }
  0xb2   :  { %v289_v25 = vadd.s32 %v288_v33, %v284_v31 }
  0xb3   :  { %v138_v7 = vshll.u32 %v137_v47, 30  ;;  %v161_v61 = vsub.s32 4, %v137_v47 }
  0xb4   :  { %v290_v8 = vadd.s32 536870912, %v289_v25 }
  0xb5   :  { %v139_v50 = vsub.s32 %v135_v27, %v138_v7  ;;  %v162_v11 = vsel %vm39_vm8, %v161_v61, %v137_v47 }
  0xb6   :  { %v949_v0 = vshrl.u32 %v290_v8, 30  ;;  %v164_v29 = vsel %vm38_vm9, 0, %v162_v11 }
  0xb7   :  { %vm140_vm4 = vcmp.lt.s32.totalorder %v139_v50, 0  ;;  %v141_v6 = vsub.s32 0, %v139_v50  ;;  %v489_v8 = vadd.s32 3, %v164_v29 }
  0xb8   :  { %v292_v23 = vshll.u32 %v949_v0, 30 }
  0xb9   :  { %v142_v60 = vsel %vm140_vm4, %v141_v6, %v139_v50 }
  0xba   :  { %v143_v10 = vclz %v142_v60  ;;  %v293_v14 = vsub.s32 %v289_v25, %v292_v23  ;;  %v315_v25 = vsub.s32 4, %v949_v0  ;;  %v181_v60 = vand.u32 3, %v164_v29 }
  0xbc   :  { %v695_v18 = vadd.s32 4294967294, %v143_v10  ;;  %vm294_vm5 = vcmp.lt.s32.totalorder %v293_v14, 0  ;;  %v295_v34 = vsub.s32 0, %v293_v14  ;;  %vm182_vm14 = vcmp.lt.s32.totalorder %v181_v60, 2 }
  0xbd   :  { %vm183_vm15 = vcmp.eq.s32.totalorder %v181_v60, 0  ;;  %vm186_vm1 = vcmp.eq.s32.totalorder %v181_v60, 2 }
  0xbe   :  { %vm696_vm6 = vcmp.lt.s32.totalorder %v695_v18, 0  ;;  %v296_v36 = vsel %vm294_vm5, %v295_v34, %v293_v14 }
  0xbf   :  { %v146_v4 = vsel %vm696_vm6, 0, %v695_v18  ;;  %v297_v40 = vclz %v296_v36  ;;  %v316_v36 = vsel %vm193_vm10, %v315_v25, %v949_v0 }
  0xc0   :  { %v147_v37 = vsub.s32 32, %v146_v4  ;;  %v151_v39 = vsub.s32 4294967266, %v146_v4  ;;  %v148_v42 = vshll.u32 %v139_v50, %v146_v4  ;;  %v663_v50 = vsel %vm23_vm11, 1, %v746_v2 }
  0xc1   :  { %v698_v28 = vadd.s32 4294967294, %v297_v40  ;;  %v664_v4 = vperm.slane %v663_v50, 0  ;;  %vm334_vm11 = vweird.f32 %v806_v16 }
  0xc2   :  { %v149_v43 = vshrl.u32 %v131_v17, %v147_v37  ;;  %v152_v45 = vadd.s32 127, %v151_v39  ;;  %v660_v17 = vpop.permute.xlu2 %659  ;;  %v490_v37 = vand.u32 3, %v489_v8  ;;  %v656_v39 = vpop.permute.xlu1 %655 }
  0xc3   :  { %vm699_vm7 = vcmp.lt.s32.totalorder %v698_v28, 0  ;;  %vm979_vm0 = vcmp.eq.s32.totalorder %v664_v4, 1 }
  0xc4   :  { %v150_v49 = vor.u32 %v149_v43, %v148_v42  ;;  %v153_v35 = vshll.u32 %v152_v45, 23  ;;  %v300_v38 = vsel %vm699_vm7, 0, %v698_v28  ;;  %v318_v45 = vsel %vm962_vm12, 0, %v316_v36 }
  0xc5   :  { %v301_v32 = vsub.s32 32, %v300_v38  ;;  %v305_v51 = vsub.s32 4294967266, %v300_v38  ;;  %v302_v56 = vshll.u32 %v293_v14, %v300_v38  ;;  %vm491_vm2 = vcmp.lt.s32.totalorder %v490_v37, 2 }
  0xc6   :  { %v154_v41 = vor.u32 4788187, %v153_v35  ;;  %v157_v53 = vcvt.s32.f32 %v150_v49  ;;  %vm492_vm3 = vcmp.eq.s32.totalorder %v490_v37, 0  ;;  %vm495_vm4 = vcmp.eq.s32.totalorder %v490_v37, 2 }
  0xc7   :  { %v303_v54 = vshrl.u32 %v285_v20, %v301_v32  ;;  %v306_v44 = vadd.s32 127, %v305_v51  ;;  %v644_v51 = vadd.s32 3, %v318_v45 }
  0xc8   :  { %v155_v21 = vand.u32 2147483647, %v154_v41 }
  0xc9   :  { %v304_v57 = vor.u32 %v303_v54, %v302_v56  ;;  %v307_v58 = vshll.u32 %v306_v44, 23  ;;  %v335_v56 = vand.u32 3, %v318_v45 }
  0xca   :  { %v158_v52 = vmul.f32 %v157_v53, %v155_v21  ;;  %v666_v21 = vsel %vm979_vm0, %v660_v17, %v656_v39  ;;  %v662_v11 = vpop.permute.xlu2 %661 }
  0xcb   :  { %v308_v62 = vor.u32 4788187, %v307_v58  ;;  %v311_v3 = vcvt.s32.f32 %v304_v57  ;;  %vm336_vm5 = vcmp.lt.s32.totalorder %v335_v56, 2  ;;  %vm337_vm6 = vcmp.eq.s32.totalorder %v335_v56, 0 }
  0xcc   :  { %v159_v59 = vxor.u32 2147483648, %v158_v52  ;;  %vm340_vm7 = vcmp.eq.s32.totalorder %v335_v56, 2 }
  0xcd   :  { %v309_v63 = vand.u32 2147483647, %v308_v62 }
  0xce   :  { %v160_v48 = vsel %vm39_vm8, %v159_v59, %v158_v52 }
  0xcf   :  { %v163_v55 = vsel %vm38_vm9, %v802_v9, %v160_v48  ;;  %v312_v13 = vmul.f32 %v311_v3, %v309_v63  ;;  %v645_v3 = vand.u32 3, %v644_v51 }
  0xd0   :  { %v165_v26 = vmul.f32 %v163_v55, %v163_v55 }
  0xd1   :  { %v313_v27 = vxor.u32 2147483648, %v312_v13  ;;  %vm646_vm8 = vcmp.lt.s32.totalorder %v645_v3, 2  ;;  %vm647_vm9 = vcmp.eq.s32.totalorder %v645_v3, 0 }
  0xd2   :  { %v166_v15 = vmul.f32 -0.001358992, %v165_v26  ;;  %v173_v22 = vmul.f32 -0.00019511016, %v165_v26 }
  0xd3   :  { %v314_v31 = vsel %vm193_vm10, %v313_v27, %v312_v13  ;;  %vm650_vm10 = vcmp.eq.s32.totalorder %v645_v3, 2 }
  0xd4   :  { %v167_v12 = vadd.f32 0.041655596, %v166_v15  ;;  %v174_v46 = vadd.f32 0.008332121, %v173_v22  ;;  %v317_v7 = vsel %vm962_vm12, %v806_v16, %v314_v31  ;;  %v658_v22 = vpop.permute.xlu1 %657 }
  0xd5   :  { %v319_v6 = vmul.f32 %v317_v7, %v317_v7  ;;  %v667_v9 = vsel %vm979_vm0, %v662_v11, %v658_v22 }
  0xd6   :  { %v168_v47 = vmul.f32 %v167_v12, %v165_v26  ;;  %v175_v33 = vmul.f32 %v174_v46, %v165_v26 }
  0xd7   :  { %v320_v10 = vmul.f32 -0.001358992, %v319_v6  ;;  %v327_v14 = vmul.f32 -0.00019511016, %v319_v6 }
  0xd8   :  { %v169_v23 = vadd.f32 -0.4999988, %v168_v47  ;;  %v176_v19 = vadd.f32 -0.16666654, %v175_v33 }
  0xd9   :  { %v321_v40 = vadd.f32 0.041655596, %v320_v10  ;;  %v328_v42 = vadd.f32 0.008332121, %v327_v14 }
  0xda   :  { %v170_v18 = vmul.f32 %v169_v23, %v165_v26  ;;  %v177_v34 = vmul.f32 %v176_v19, %v165_v26 }
  0xdb   :  { %v322_v28 = vmul.f32 %v321_v40, %v319_v6  ;;  %v329_v49 = vmul.f32 %v328_v42, %v319_v6 }
  0xdc   :  { %v171_v43 = vadd.f32 1.0, %v170_v18  ;;  %v178_v2 = vadd.f32 1.0, %v177_v34 }
  0xdd   :  { %v323_v41 = vadd.f32 -0.4999988, %v322_v28  ;;  %v330_v20 = vadd.f32 -0.16666654, %v329_v49 }
  0xde   :  { %v179_v35 = vmul.f32 %v178_v2, %v163_v55  ;;  %v187_v38 = vxor.u32 2147483648, %v171_v43 }
  0xdf   :  { %v324_v53 = vmul.f32 %v323_v41, %v319_v6  ;;  %v331_v54 = vmul.f32 %v330_v20, %v319_v6 }
  0xe0   :  { %v184_v32 = vxor.u32 2147483648, %v179_v35  ;;  %v188_v52 = vsel %vm186_vm1, %v187_v38, %v179_v35  ;;  %v497_v58 = vsel %vm495_vm4, %v187_v38, %v179_v35 }
  0xe1   :  { %v325_v62 = vadd.f32 1.0, %v324_v53  ;;  %v332_v48 = vadd.f32 1.0, %v331_v54 }
  0xe2   :  { %v185_v44 = vsel %vm183_vm15, %v171_v43, %v184_v32  ;;  %v494_v57 = vsel %vm492_vm3, %v171_v43, %v184_v32 }
  0xe3   :  { %v189_v59 = vsel %vm182_vm14, %v185_v44, %v188_v52  ;;  %v498_v61 = vsel %vm491_vm2, %v494_v57, %v497_v58  ;;  %v333_v13 = vmul.f32 %v332_v48, %v317_v7  ;;  %v341_v15 = vxor.u32 2147483648, %v325_v62 }
  0xe4   :  { %v190_v55 = vsel %vm180_vm13, nan, %v189_v59  ;;  %v499_v63 = vsel %vm180_vm13, nan, %v498_v61 }
  0xe5   :  { %v668_v26 = vmul.f32 %v190_v55, %v784_v1  ;;  %v670_v24 = vmul.f32 %v666_v21, %v499_v63  ;;  %v338_v29 = vxor.u32 2147483648, %v333_v13  ;;  %v342_v46 = vsel %vm340_vm7, %v341_v15, %v333_v13 }
  0xe6   :  { %v652_v30 = vsel %vm650_vm10, %v341_v15, %v333_v13 }
  0xe7   :  { %v672_v27 = vadd.f32 %v670_v24, %v668_v26  ;;  %v339_v12 = vsel %vm337_vm6, %v325_v62, %v338_v29  ;;  %v649_v1 = vsel %vm647_vm9, %v325_v62, %v338_v29 }
  0xe8   :  { %v343_v31 = vsel %vm336_vm5, %v339_v12, %v342_v46  ;;  %v653_v47 = vsel %vm646_vm8, %v649_v1, %v652_v30 }
  0xe9   :  { %674 = vst [vmem:[#allocation2] sm:$0xff] %v672_v27  ;;  %v344_v33 = vsel %vm334_vm11, nan, %v343_v31  ;;  %v654_v25 = vsel %vm334_vm11, nan, %v653_v47 }
  0xea   :  { %v669_v7 = vmul.f32 %v344_v33, %v795_v5  ;;  %v671_v8 = vmul.f32 %v667_v9, %v654_v25 }
  0xec   :  { %v673_v50 = vadd.f32 %v671_v8, %v669_v7 }
  0xee   :  { %675 = vst [vmem:[#allocation2 + $0x8] sm:$0xff] %v673_v50 }
  0xef   :  { %688 = dma.vmem_to_hbm [thread:$0]  %s681_s24, 256, %s683_s27, [#allocation3], %s756_s28, %s756_s28, %s757_s29  }
  0xf0   :  { %744 = dma.done.wait [#allocation3], 256  }
  0xf1   :  { %745 = vsyncadd [#allocation3], 4294967040 }
  0xf2   :  { %693 = vsyncpa [#allocation3], 1 }

</bundles_post_ra>
